<compile_context>
chip_gen: v7x
topology: tpu7x:2x2x1
jax: 0.10.0
libtpu: 0.0.40
codegen_flags: <defaults>
</compile_context>

<pallas_src>
import functools

import jax
import jax.numpy as jnp
from jax.experimental import pallas as pl
from jax.experimental.pallas import tpu as pltpu


def _cdiv(a, b):
    return (a + b - 1) // b


def _round_up(x, m):
    return _cdiv(x, m) * m


def _sensor_depth_loss_kernel(
    ray_ref, starts_ref, sdf_ref,                              # inputs
    partial_ref,                                               # (8, 128) per-shard packed partial sums
    acc_l1, acc_valid, acc_nfs, acc_nsdf, acc_fs, acc_sdf,     # VMEM scratch
    *, truncation, n_rays, tile_n, steps_per_shard):
    s_id = pl.program_id(0)        # megacore shard (parallel axis)
    j = pl.program_id(1)           # ray-tile step within the shard (arbitrary axis)

    @pl.when(j == 0)
    def _():
        for r in (acc_l1, acc_valid, acc_nfs, acc_nsdf, acc_fs, acc_sdf):
            r[...] = jnp.zeros_like(r)

    # Logical ray-row offset of this tile.  For overflow steps (odd tile counts
    # under 2-way sharding) and for the trailing partial tile, row_mask zeroes
    # every contribution (all terms below are select-gated, so garbage rows --
    # even NaN/Inf -- contribute exactly 0).
    row0 = (s_id * steps_per_shard + j) * tile_n
    rows = jax.lax.broadcasted_iota(jnp.int32, (tile_n, 1), 0) + row0
    row_mask = rows < n_rays                                   # (tile_n, 1)

    gt = ray_ref[:, 0:1]           # (tile_n, 1) depth ground truth
    pr = ray_ref[:, 1:2]           # (tile_n, 1) predicted depth
    dn = ray_ref[:, 2:3]           # (tile_n, 1) directions norm

    valid = jnp.logical_and(row_mask, gt > 0.0)                # (tile_n, 1)
    inv_dn = pl.reciprocal(dn, approx=False)                   # EUP slot
    lo = (gt - truncation) * dn                                # starts-space thresholds
    hi = (gt + truncation) * dn
    lo_f = jnp.where(valid, lo, -jnp.inf)                      # front: st < lo_f
    hi_b = jnp.where(valid, hi, jnp.inf)                       # back : st > hi_b

    st = starts_ref[...]                                       # (tile_n, S)
    sdf = sdf_ref[...]                                         # (tile_n, S)

    front = st < lo_f                                          # single compare
    back = st > hi_b                                           # single compare
    sdf_m = jnp.logical_and(valid, jnp.logical_not(jnp.logical_or(front, back)))

    z = st * inv_dn                                            # only feeds the sdf term
    fs_e = jnp.where(front, jnp.maximum(truncation - sdf, 0.0), 0.0)
    d = z + sdf - gt

    def fold(x):
        # (tile_n, C) -> (8, C): pure VPU adds over 8-row groups; keeps the
        # accumulators tiny and off the vector load/store slots.
        return jnp.sum(x.reshape(tile_n // 8, 8, x.shape[-1]), axis=0)

    acc_l1[...] += fold(jnp.where(valid, jnp.abs(gt - pr), 0.0))
    acc_valid[...] += fold(valid.astype(jnp.float32))
    acc_nfs[...] += fold(front.astype(jnp.float32))
    acc_nsdf[...] += fold(sdf_m.astype(jnp.float32))
    acc_fs[...] += fold(fs_e * fs_e)
    acc_sdf[...] += fold(jnp.where(sdf_m, d * d, 0.0))

    # Finalize once per shard: single cross-lane/sublane reduction pass, packed
    # into one lane-dense (8, 128) output block (row k = k-th partial sum).
    @pl.when(j == pl.num_programs(1) - 1)
    def _():
        sums = (jnp.sum(acc_l1[...]), jnp.sum(acc_valid[...]),
                jnp.sum(acc_nfs[...]), jnp.sum(acc_nsdf[...]),
                jnp.sum(acc_fs[...]), jnp.sum(acc_sdf[...]))
        rid = jax.lax.broadcasted_iota(jnp.int32, (8, 128), 0)
        out = jnp.zeros((8, 128), jnp.float32)
        for k, v in enumerate(sums):
            out = jnp.where(rid == k, v, out)
        partial_ref[...] = out


def _pick_tile_rows(n_rays, n_samples, *, vmem_budget=26 * 1024 * 1024,
                    max_rows=8192):
    """Largest multiple-of-8 row tile whose double-buffered inputs fit the budget.

    VMEM lane-pads the minor dim to 128, so per ray row (f32, x2 buffers):
      starts + sdf: 2 * round_up(S, 128) * 4 bytes, fused per-ray slab: 128 * 4.
    """
    sp = _round_up(max(n_samples, 1), 128)
    per_row = 2 * 4 * (2 * sp + 128)
    rows = max(8, (vmem_budget // per_row) // 8 * 8)
    rows = min(rows, max_rows, _round_up(n_rays, 8))
    return rows


def sensor_depth_loss(batch_depth, depth_pred, starts, field_sdf,
                      directions_norm, truncation, *, max_tile_rows=8192):
    """Pallas implementation of SensorDepthLoss.forward.

    batch_depth:      (N,)        - batch['depth']
    depth_pred:       (N, 1)      - outputs['depth']
    starts:           (N, S, 1)   - ray_samples.frustums.starts
    field_sdf:        (N, S, 1)   - field_outputs[SDF]
    directions_norm:  (N, 1)      - outputs['directions_norm']
    """
    N = batch_depth.shape[0]
    S = starts.shape[1]

    gt = batch_depth.astype(jnp.float32).reshape(N)
    pr = depth_pred.astype(jnp.float32).reshape(N)
    dn = directions_norm.astype(jnp.float32).reshape(N)
    ray = jnp.stack([gt, pr, dn], axis=1)                       # (N, 3) tiny fused slab
    starts2 = starts.astype(jnp.float32).reshape(N, S)          # native layout, no copy
    sdf2 = field_sdf.astype(jnp.float32).reshape(N, S)          # native layout, no copy

    tile_n = _pick_tile_rows(N, S, max_rows=max_tile_rows)
    num_tiles = _cdiv(N, tile_n)
    n_shards = 2 if num_tiles >= 2 else 1                       # v7x megacore; harmless elsewhere
    steps = _cdiv(num_tiles, n_shards)

    def row_map(s, j):
        # Clamp overflow steps onto the last real tile; their contributions are
        # zeroed in-kernel by the logical row mask (no double counting).
        return (jnp.minimum(s * steps + j, num_tiles - 1), 0)

    kernel = functools.partial(
        _sensor_depth_loss_kernel,
        truncation=float(truncation), n_rays=N, tile_n=tile_n,
        steps_per_shard=steps)

    partials = pl.pallas_call(
        kernel,
        out_shape=jax.ShapeDtypeStruct((8 * n_shards, 128), jnp.float32),
        grid_spec=pltpu.PrefetchScalarGridSpec(
            num_scalar_prefetch=0,
            grid=(n_shards, steps),
            in_specs=[
                pl.BlockSpec((tile_n, 3), row_map),             # fused per-ray rows
                pl.BlockSpec((tile_n, S), row_map),             # starts (native)
                pl.BlockSpec((tile_n, S), row_map),             # pred_sdf (native)
            ],
            out_specs=pl.BlockSpec((8, 128), lambda s, j: (s, 0)),
            scratch_shapes=[
                pltpu.VMEM((8, 1), jnp.float32),                # acc_l1
                pltpu.VMEM((8, 1), jnp.float32),                # acc_valid
                pltpu.VMEM((8, S), jnp.float32),                # acc_nfs
                pltpu.VMEM((8, S), jnp.float32),                # acc_nsdf
                pltpu.VMEM((8, S), jnp.float32),                # acc_fs
                pltpu.VMEM((8, S), jnp.float32),                # acc_sdf
            ],
        ),
        compiler_params=pltpu.CompilerParams(
            dimension_semantics=("parallel", "arbitrary"),
            vmem_limit_bytes=40 * 1024 * 1024),
    )(ray, starts2, sdf2)

    # Global combine + loss weights from GLOBAL counts (required for sharding).
    p = jnp.sum(partials.reshape(n_shards, 8, 128)[:, :6, 0], axis=0)
    sum_l1, n_valid, n_fs, n_sdf, fs_sum, sdf_sum = (p[i] for i in range(6))
    l1 = sum_l1 / (n_valid + 1e-6)
    n_tot = n_fs + n_sdf + 1e-6
    fs = (fs_sum / float(N * S)) * (1.0 - n_fs / n_tot)
    sdfl = (sdf_sum / float(N * S)) * (1.0 - n_sdf / n_tot)
    return l1, fs, sdfl


def sensor_depth_loss_ref(batch_depth, depth_pred, starts, field_sdf,
                          directions_norm, truncation):
    """Pure-JAX reference mirroring the PyTorch module."""
    depth_gt = batch_depth[..., None].astype(jnp.float32)
    valid = (depth_gt > 0.0).astype(jnp.float32)
    l1 = jnp.sum(valid * jnp.abs(depth_gt - depth_pred)) / (jnp.sum(valid) + 1e-6)

    pred_sdf = field_sdf[..., 0]
    z_vals = starts[..., 0] / directions_norm
    front = valid * (z_vals < depth_gt - truncation).astype(jnp.float32)
    back = valid * (z_vals > depth_gt + truncation).astype(jnp.float32)
    sdf_mask = valid * (1.0 - front) * (1.0 - back)
    n_fs = jnp.sum(front)
    n_sdf = jnp.sum(sdf_mask)
    n_tot = n_fs + n_sdf + 1e-6
    fs_w = 1.0 - n_fs / n_tot
    sdf_w = 1.0 - n_sdf / n_tot
    fs_loss = jnp.mean((jnp.maximum(truncation - pred_sdf, 0.0) * front) ** 2) * fs_w
    sdf_loss = jnp.mean(((z_vals + pred_sdf - depth_gt) ** 2) * sdf_mask) * sdf_w
    return l1, fs_loss, sdf_loss


if __name__ == "__main__":
    truncation = 0.05   # module hyperparameter (deterministic, set in-script)

    def make_inputs(key, N, S):
        k1, k2, k3, k4, k5, k6 = jax.random.split(key, 6)
        depth_raw = jax.random.uniform(k1, (N,), jnp.float32, 0.2, 2.0)
        zero_mask = jax.random.uniform(k2, (N,), jnp.float32) < 0.25
        batch_depth = jnp.where(zero_mask, 0.0, depth_raw)                   # (N,)
        depth_pred = jax.random.uniform(k3, (N, 1), jnp.float32, 0.2, 2.0)   # (N, 1)
        starts = jax.random.uniform(k4, (N, S, 1), jnp.float32, 0.0, 2.5)    # (N, S, 1)
        field_sdf = jax.random.uniform(k5, (N, S, 1), jnp.float32, -0.2, 0.2)
        directions_norm = jax.random.uniform(k6, (N, 1), jnp.float32, 1.0, 1.5)
        return batch_depth, depth_pred, starts, field_sdf, directions_norm

    # Small canonical shape (single tile, single shard).
    args = make_inputs(jax.random.PRNGKey(0), 64, 32)
    out = sensor_depth_loss(*args, truncation)
    jax.block_until_ready(out)
    ref = sensor_depth_loss_ref(*args, truncation)
    for a, b in zip(out, ref):
        assert jnp.allclose(a, b, rtol=1e-5, atol=1e-6), (a, b)

    # Ragged shape exercising multi-tile streaming, 2-way sharding, the clamped
    # overflow step and the in-kernel remainder-row masking (N=300, tile=64).
    args2 = make_inputs(jax.random.PRNGKey(1), 300, 32)
    out2 = sensor_depth_loss(*args2, truncation, max_tile_rows=64)
    jax.block_until_ready(out2)
    ref2 = sensor_depth_loss_ref(*args2, truncation)
    for a, b in zip(out2, ref2):
        assert jnp.allclose(a, b, rtol=1e-5, atol=1e-6), (a, b)

    print("KERNEL_OK")
</pallas_src>

<mosaic_0001>
module attributes {stable_mosaic.version = 11 : i64} {
  func.func @_sensor_depth_loss_kernel(%arg0: i32, %arg1: i32, %arg2: memref<64x3xf32, #tpu.memory_space<vmem>>, %arg3: memref<64x32xf32, #tpu.memory_space<vmem>>, %arg4: memref<64x32xf32, #tpu.memory_space<vmem>>, %arg5: memref<8x128xf32, #tpu.memory_space<vmem>>, %arg6: memref<8x1xf32, #tpu.memory_space<vmem>>, %arg7: memref<8x1xf32, #tpu.memory_space<vmem>>, %arg8: memref<8x32xf32, #tpu.memory_space<vmem>>, %arg9: memref<8x32xf32, #tpu.memory_space<vmem>>, %arg10: memref<8x32xf32, #tpu.memory_space<vmem>>, %arg11: memref<8x32xf32, #tpu.memory_space<vmem>>) attributes {dimension_semantics = [#tpu.dimension_semantics<parallel>, #tpu.dimension_semantics<arbitrary>], iteration_bounds = array<i64: 1, 1>, scalar_prefetch = 0 : i64, scratch_operands = 6 : i64, tpu.core_type = #tpu.core_type<tc>, window_params = [{transform_indices = @transform_0, window_bounds = array<i64: 64, 3>}, {transform_indices = @transform_1, window_bounds = array<i64: 64, 32>}, {transform_indices = @transform_2, window_bounds = array<i64: 64, 32>}, {transform_indices = @transform_3, window_bounds = array<i64: 8, 128>}]} {
    %c0_i32 = arith.constant 0 : i32
    %0 = arith.cmpi eq, %arg1, %c0_i32 : i32
    %1 = arith.extui %0 : i1 to i32
    %c0_i32_0 = arith.constant 0 : i32
    %2 = arith.cmpi ne, %1, %c0_i32_0 : i32
    scf.if %2 {
      %cst_51 = arith.constant 0.000000e+00 : f32
      %96 = vector.broadcast %cst_51 : f32 to vector<8x1xf32>
      %c0_52 = arith.constant 0 : index
      %c0_53 = arith.constant 0 : index
      %97 = vector.load %arg6[%c0_52, %c0_53] : memref<8x1xf32, #tpu.memory_space<vmem>>, vector<8x1xf32>
      tpu.vector_store %arg6[%c0_52, %c0_53], %96 {strides = array<i32>} : memref<8x1xf32, #tpu.memory_space<vmem>>, vector<8x1xf32>,
      %cst_54 = arith.constant 0.000000e+00 : f32
      %98 = vector.broadcast %cst_54 : f32 to vector<8x1xf32>
      %c0_55 = arith.constant 0 : index
      %c0_56 = arith.constant 0 : index
      %99 = vector.load %arg7[%c0_55, %c0_56] : memref<8x1xf32, #tpu.memory_space<vmem>>, vector<8x1xf32>
      tpu.vector_store %arg7[%c0_55, %c0_56], %98 {strides = array<i32>} : memref<8x1xf32, #tpu.memory_space<vmem>>, vector<8x1xf32>,
      %cst_57 = arith.constant 0.000000e+00 : f32
      %100 = vector.broadcast %cst_57 : f32 to vector<8x32xf32>
      %c0_58 = arith.constant 0 : index
      %c0_59 = arith.constant 0 : index
      %101 = vector.load %arg8[%c0_58, %c0_59] : memref<8x32xf32, #tpu.memory_space<vmem>>, vector<8x32xf32>
      tpu.vector_store %arg8[%c0_58, %c0_59], %100 {strides = array<i32>} : memref<8x32xf32, #tpu.memory_space<vmem>>, vector<8x32xf32>,
      %cst_60 = arith.constant 0.000000e+00 : f32
      %102 = vector.broadcast %cst_60 : f32 to vector<8x32xf32>
      %c0_61 = arith.constant 0 : index
      %c0_62 = arith.constant 0 : index
      %103 = vector.load %arg9[%c0_61, %c0_62] : memref<8x32xf32, #tpu.memory_space<vmem>>, vector<8x32xf32>
      tpu.vector_store %arg9[%c0_61, %c0_62], %102 {strides = array<i32>} : memref<8x32xf32, #tpu.memory_space<vmem>>, vector<8x32xf32>,
      %cst_63 = arith.constant 0.000000e+00 : f32
      %104 = vector.broadcast %cst_63 : f32 to vector<8x32xf32>
      %c0_64 = arith.constant 0 : index
      %c0_65 = arith.constant 0 : index
      %105 = vector.load %arg10[%c0_64, %c0_65] : memref<8x32xf32, #tpu.memory_space<vmem>>, vector<8x32xf32>
      tpu.vector_store %arg10[%c0_64, %c0_65], %104 {strides = array<i32>} : memref<8x32xf32, #tpu.memory_space<vmem>>, vector<8x32xf32>,
      %cst_66 = arith.constant 0.000000e+00 : f32
      %106 = vector.broadcast %cst_66 : f32 to vector<8x32xf32>
      %c0_67 = arith.constant 0 : index
      %c0_68 = arith.constant 0 : index
      %107 = vector.load %arg11[%c0_67, %c0_68] : memref<8x32xf32, #tpu.memory_space<vmem>>, vector<8x32xf32>
      tpu.vector_store %arg11[%c0_67, %c0_68], %106 {strides = array<i32>} : memref<8x32xf32, #tpu.memory_space<vmem>>, vector<8x32xf32>,
    } else {
    }
    %c1_i32 = arith.constant 1 : i32
    %3 = arith.muli %arg0, %c1_i32 : i32
    %4 = arith.addi %3, %arg1 : i32
    %c64_i32 = arith.constant 64 : i32
    %5 = arith.muli %4, %c64_i32 : i32
    %6 = tpu.iota {dimensions = array<i32: 0>} : vector<64x1xi32>
    %7 = vector.broadcast %5 : i32 to vector<64x1xi32>
    %8 = arith.addi %6, %7 : vector<64x1xi32>
    %c64_i32_1 = arith.constant 64 : i32
    %9 = vector.broadcast %c64_i32_1 : i32 to vector<64x1xi32>
    %10 = arith.cmpi slt, %8, %9 : vector<64x1xi32>
    %c0 = arith.constant 0 : index
    %c0_2 = arith.constant 0 : index
    %11 = vector.load %arg2[%c0, %c0_2] : memref<64x3xf32, #tpu.memory_space<vmem>>, vector<64x1xf32>
    %c0_3 = arith.constant 0 : index
    %c1 = arith.constant 1 : index
    %12 = vector.load %arg2[%c0_3, %c1] : memref<64x3xf32, #tpu.memory_space<vmem>>, vector<64x1xf32>
    %c0_4 = arith.constant 0 : index
    %c2 = arith.constant 2 : index
    %13 = vector.load %arg2[%c0_4, %c2] : memref<64x3xf32, #tpu.memory_space<vmem>>, vector<64x1xf32>
    %cst = arith.constant 0.000000e+00 : f32
    %14 = vector.broadcast %cst : f32 to vector<64x1xf32>
    %15 = arith.cmpf ogt, %11, %14 : vector<64x1xf32>
    %16 = arith.andi %10, %15 : vector<64x1xi1>
    %17 = tpu.reciprocal %13 : vector<64x1xf32> -> vector<64x1xf32>
    %cst_5 = arith.constant 5.000000e-02 : f32
    %18 = vector.broadcast %cst_5 : f32 to vector<64x1xf32>
    %19 = arith.subf %11, %18 : vector<64x1xf32>
    %20 = arith.mulf %19, %13 : vector<64x1xf32>
    %cst_6 = arith.constant 5.000000e-02 : f32
    %21 = vector.broadcast %cst_6 : f32 to vector<64x1xf32>
    %22 = arith.addf %11, %21 : vector<64x1xf32>
    %23 = arith.mulf %22, %13 : vector<64x1xf32>
    %cst_7 = arith.constant 0xFF800000 : f32
    %24 = vector.broadcast %cst_7 : f32 to vector<64x1xf32>
    %25 = arith.select %16, %20, %24 : vector<64x1xi1>, vector<64x1xf32>
    %cst_8 = arith.constant 0x7F800000 : f32
    %26 = vector.broadcast %cst_8 : f32 to vector<64x1xf32>
    %27 = arith.select %16, %23, %26 : vector<64x1xi1>, vector<64x1xf32>
    %c0_9 = arith.constant 0 : index
    %c0_10 = arith.constant 0 : index
    %28 = vector.load %arg3[%c0_9, %c0_10] : memref<64x32xf32, #tpu.memory_space<vmem>>, vector<64x32xf32>
    %c0_11 = arith.constant 0 : index
    %c0_12 = arith.constant 0 : index
    %29 = vector.load %arg4[%c0_11, %c0_12] : memref<64x32xf32, #tpu.memory_space<vmem>>, vector<64x32xf32>
    %30 = vector.broadcast %25 : vector<64x1xf32> to vector<64x32xf32>
    %31 = arith.cmpf olt, %28, %30 : vector<64x32xf32>
    %32 = vector.broadcast %27 : vector<64x1xf32> to vector<64x32xf32>
    %33 = arith.cmpf ogt, %28, %32 : vector<64x32xf32>
    %34 = arith.ori %31, %33 : vector<64x32xi1>
    %cst_13 = arith.constant dense<true> : vector<64x32xi1>
    %35 = arith.xori %34, %cst_13 : vector<64x32xi1>
    %36 = vector.broadcast %16 : vector<64x1xi1> to vector<64x32xi1>
    %37 = arith.andi %36, %35 : vector<64x32xi1>
    %38 = vector.broadcast %17 : vector<64x1xf32> to vector<64x32xf32>
    %39 = arith.mulf %28, %38 : vector<64x32xf32>
    %cst_14 = arith.constant 5.000000e-02 : f32
    %40 = vector.broadcast %cst_14 : f32 to vector<64x32xf32>
    %41 = arith.subf %40, %29 : vector<64x32xf32>
    %cst_15 = arith.constant 0.000000e+00 : f32
    %42 = vector.broadcast %cst_15 : f32 to vector<64x32xf32>
    %43 = arith.maximumf %41, %42 : vector<64x32xf32>
    %cst_16 = arith.constant 0.000000e+00 : f32
    %44 = vector.broadcast %cst_16 : f32 to vector<64x32xf32>
    %45 = arith.select %31, %43, %44 : vector<64x32xi1>, vector<64x32xf32>
    %46 = arith.addf %39, %29 : vector<64x32xf32>
    %47 = vector.broadcast %11 : vector<64x1xf32> to vector<64x32xf32>
    %48 = arith.subf %46, %47 : vector<64x32xf32>
    %c0_17 = arith.constant 0 : index
    %c0_18 = arith.constant 0 : index
    %49 = vector.load %arg6[%c0_17, %c0_18] : memref<8x1xf32, #tpu.memory_space<vmem>>, vector<8x1xf32>
    %50 = arith.subf %11, %12 : vector<64x1xf32>
    %51 = math.absf %50 : vector<64x1xf32>
    %cst_19 = arith.constant 0.000000e+00 : f32
    %52 = vector.broadcast %cst_19 : f32 to vector<64x1xf32>
    %53 = arith.select %16, %51, %52 : vector<64x1xi1>, vector<64x1xf32>
    %54 = vector.shape_cast %53 : vector<64x1xf32> to vector<8x8x1xf32>
    %cst_20 = arith.constant dense<0.000000e+00> : vector<8x1xf32>
    %55 = vector.multi_reduction <add>, %54, %cst_20 [0] : vector<8x8x1xf32> to vector<8x1xf32>
    %56 = arith.addf %49, %55 : vector<8x1xf32>
    %c0_21 = arith.constant 0 : index
    %c0_22 = arith.constant 0 : index
    %57 = vector.load %arg6[%c0_21, %c0_22] : memref<8x1xf32, #tpu.memory_space<vmem>>, vector<8x1xf32>
    tpu.vector_store %arg6[%c0_21, %c0_22], %56 {strides = array<i32>} : memref<8x1xf32, #tpu.memory_space<vmem>>, vector<8x1xf32>,
    %c0_23 = arith.constant 0 : index
    %c0_24 = arith.constant 0 : index
    %58 = vector.load %arg7[%c0_23, %c0_24] : memref<8x1xf32, #tpu.memory_space<vmem>>, vector<8x1xf32>
    %59 = arith.extui %16 : vector<64x1xi1> to vector<64x1xi32>
    %60 = arith.sitofp %59 : vector<64x1xi32> to vector<64x1xf32>
    %61 = vector.shape_cast %60 : vector<64x1xf32> to vector<8x8x1xf32>
    %cst_25 = arith.constant dense<0.000000e+00> : vector<8x1xf32>
    %62 = vector.multi_reduction <add>, %61, %cst_25 [0] : vector<8x8x1xf32> to vector<8x1xf32>
    %63 = arith.addf %58, %62 : vector<8x1xf32>
    %c0_26 = arith.constant 0 : index
    %c0_27 = arith.constant 0 : index
    %64 = vector.load %arg7[%c0_26, %c0_27] : memref<8x1xf32, #tpu.memory_space<vmem>>, vector<8x1xf32>
    tpu.vector_store %arg7[%c0_26, %c0_27], %63 {strides = array<i32>} : memref<8x1xf32, #tpu.memory_space<vmem>>, vector<8x1xf32>,
    %c0_28 = arith.constant 0 : index
    %c0_29 = arith.constant 0 : index
    %65 = vector.load %arg8[%c0_28, %c0_29] : memref<8x32xf32, #tpu.memory_space<vmem>>, vector<8x32xf32>
    %66 = arith.extui %31 : vector<64x32xi1> to vector<64x32xi32>
    %67 = arith.sitofp %66 : vector<64x32xi32> to vector<64x32xf32>
    %68 = vector.shape_cast %67 : vector<64x32xf32> to vector<8x8x32xf32>
    %cst_30 = arith.constant dense<0.000000e+00> : vector<8x32xf32>
    %69 = vector.multi_reduction <add>, %68, %cst_30 [0] : vector<8x8x32xf32> to vector<8x32xf32>
    %70 = arith.addf %65, %69 : vector<8x32xf32>
    %c0_31 = arith.constant 0 : index
    %c0_32 = arith.constant 0 : index
    %71 = vector.load %arg8[%c0_31, %c0_32] : memref<8x32xf32, #tpu.memory_space<vmem>>, vector<8x32xf32>
    tpu.vector_store %arg8[%c0_31, %c0_32], %70 {strides = array<i32>} : memref<8x32xf32, #tpu.memory_space<vmem>>, vector<8x32xf32>,
    %c0_33 = arith.constant 0 : index
    %c0_34 = arith.constant 0 : index
    %72 = vector.load %arg9[%c0_33, %c0_34] : memref<8x32xf32, #tpu.memory_space<vmem>>, vector<8x32xf32>
    %73 = arith.extui %37 : vector<64x32xi1> to vector<64x32xi32>
    %74 = arith.sitofp %73 : vector<64x32xi32> to vector<64x32xf32>
    %75 = vector.shape_cast %74 : vector<64x32xf32> to vector<8x8x32xf32>
    %cst_35 = arith.constant dense<0.000000e+00> : vector<8x32xf32>
    %76 = vector.multi_reduction <add>, %75, %cst_35 [0] : vector<8x8x32xf32> to vector<8x32xf32>
    %77 = arith.addf %72, %76 : vector<8x32xf32>
    %c0_36 = arith.constant 0 : index
    %c0_37 = arith.constant 0 : index
    %78 = vector.load %arg9[%c0_36, %c0_37] : memref<8x32xf32, #tpu.memory_space<vmem>>, vector<8x32xf32>
    tpu.vector_store %arg9[%c0_36, %c0_37], %77 {strides = array<i32>} : memref<8x32xf32, #tpu.memory_space<vmem>>, vector<8x32xf32>,
    %c0_38 = arith.constant 0 : index
    %c0_39 = arith.constant 0 : index
    %79 = vector.load %arg10[%c0_38, %c0_39] : memref<8x32xf32, #tpu.memory_space<vmem>>, vector<8x32xf32>
    %80 = arith.mulf %45, %45 : vector<64x32xf32>
    %81 = vector.shape_cast %80 : vector<64x32xf32> to vector<8x8x32xf32>
    %cst_40 = arith.constant dense<0.000000e+00> : vector<8x32xf32>
    %82 = vector.multi_reduction <add>, %81, %cst_40 [0] : vector<8x8x32xf32> to vector<8x32xf32>
    %83 = arith.addf %79, %82 : vector<8x32xf32>
    %c0_41 = arith.constant 0 : index
    %c0_42 = arith.constant 0 : index
    %84 = vector.load %arg10[%c0_41, %c0_42] : memref<8x32xf32, #tpu.memory_space<vmem>>, vector<8x32xf32>
    tpu.vector_store %arg10[%c0_41, %c0_42], %83 {strides = array<i32>} : memref<8x32xf32, #tpu.memory_space<vmem>>, vector<8x32xf32>,
    %c0_43 = arith.constant 0 : index
    %c0_44 = arith.constant 0 : index
    %85 = vector.load %arg11[%c0_43, %c0_44] : memref<8x32xf32, #tpu.memory_space<vmem>>, vector<8x32xf32>
    %86 = arith.mulf %48, %48 : vector<64x32xf32>
    %cst_45 = arith.constant 0.000000e+00 : f32
    %87 = vector.broadcast %cst_45 : f32 to vector<64x32xf32>
    %88 = arith.select %37, %86, %87 : vector<64x32xi1>, vector<64x32xf32>
    %89 = vector.shape_cast %88 : vector<64x32xf32> to vector<8x8x32xf32>
    %cst_46 = arith.constant dense<0.000000e+00> : vector<8x32xf32>
    %90 = vector.multi_reduction <add>, %89, %cst_46 [0] : vector<8x8x32xf32> to vector<8x32xf32>
    %91 = arith.addf %85, %90 : vector<8x32xf32>
    %c0_47 = arith.constant 0 : index
    %c0_48 = arith.constant 0 : index
    %92 = vector.load %arg11[%c0_47, %c0_48] : memref<8x32xf32, #tpu.memory_space<vmem>>, vector<8x32xf32>
    tpu.vector_store %arg11[%c0_47, %c0_48], %91 {strides = array<i32>} : memref<8x32xf32, #tpu.memory_space<vmem>>, vector<8x32xf32>,
    %c0_i32_49 = arith.constant 0 : i32
    %93 = arith.cmpi eq, %arg1, %c0_i32_49 : i32
    %94 = arith.extui %93 : i1 to i32
    %c0_i32_50 = arith.constant 0 : i32
    %95 = arith.cmpi ne, %94, %c0_i32_50 : i32
    scf.if %95 {
      %c0_51 = arith.constant 0 : index
      %c0_52 = arith.constant 0 : index
      %96 = vector.load %arg6[%c0_51, %c0_52] : memref<8x1xf32, #tpu.memory_space<vmem>>, vector<8x1xf32>
      %97 = vector.shape_cast %96 : vector<8x1xf32> to vector<1x8x1xf32>
      %cst_53 = arith.constant dense<0.000000e+00> : vector<1xf32>
      %98 = vector.multi_reduction <add>, %97, %cst_53 [1, 2] : vector<1x8x1xf32> to vector<1xf32>
      %99 = vector.shape_cast %98 : vector<1xf32> to vector<1x1x1xf32>
      %100 = vector.extract %99[0, 0, 0] : f32 from vector<1x1x1xf32>
      %c0_54 = arith.constant 0 : index
      %c0_55 = arith.constant 0 : index
      %101 = vector.load %arg7[%c0_54, %c0_55] : memref<8x1xf32, #tpu.memory_space<vmem>>, vector<8x1xf32>
      %102 = vector.shape_cast %101 : vector<8x1xf32> to vector<1x8x1xf32>
      %cst_56 = arith.constant dense<0.000000e+00> : vector<1xf32>
      %103 = vector.multi_reduction <add>, %102, %cst_56 [1, 2] : vector<1x8x1xf32> to vector<1xf32>
      %104 = vector.shape_cast %103 : vector<1xf32> to vector<1x1x1xf32>
      %105 = vector.extract %104[0, 0, 0] : f32 from vector<1x1x1xf32>
      %c0_57 = arith.constant 0 : index
      %c0_58 = arith.constant 0 : index
      %106 = vector.load %arg8[%c0_57, %c0_58] : memref<8x32xf32, #tpu.memory_space<vmem>>, vector<8x32xf32>
      %107 = vector.shape_cast %106 : vector<8x32xf32> to vector<1x8x32xf32>
      %cst_59 = arith.constant dense<0.000000e+00> : vector<1xf32>
      %108 = vector.multi_reduction <add>, %107, %cst_59 [1, 2] : vector<1x8x32xf32> to vector<1xf32>
      %109 = vector.shape_cast %108 : vector<1xf32> to vector<1x1x1xf32>
      %110 = vector.extract %109[0, 0, 0] : f32 from vector<1x1x1xf32>
      %c0_60 = arith.constant 0 : index
      %c0_61 = arith.constant 0 : index
      %111 = vector.load %arg9[%c0_60, %c0_61] : memref<8x32xf32, #tpu.memory_space<vmem>>, vector<8x32xf32>
      %112 = vector.shape_cast %111 : vector<8x32xf32> to vector<1x8x32xf32>
      %cst_62 = arith.constant dense<0.000000e+00> : vector<1xf32>
      %113 = vector.multi_reduction <add>, %112, %cst_62 [1, 2] : vector<1x8x32xf32> to vector<1xf32>
      %114 = vector.shape_cast %113 : vector<1xf32> to vector<1x1x1xf32>
      %115 = vector.extract %114[0, 0, 0] : f32 from vector<1x1x1xf32>
      %c0_63 = arith.constant 0 : index
      %c0_64 = arith.constant 0 : index
      %116 = vector.load %arg10[%c0_63, %c0_64] : memref<8x32xf32, #tpu.memory_space<vmem>>, vector<8x32xf32>
      %117 = vector.shape_cast %116 : vector<8x32xf32> to vector<1x8x32xf32>
      %cst_65 = arith.constant dense<0.000000e+00> : vector<1xf32>
      %118 = vector.multi_reduction <add>, %117, %cst_65 [1, 2] : vector<1x8x32xf32> to vector<1xf32>
      %119 = vector.shape_cast %118 : vector<1xf32> to vector<1x1x1xf32>
      %120 = vector.extract %119[0, 0, 0] : f32 from vector<1x1x1xf32>
      %c0_66 = arith.constant 0 : index
      %c0_67 = arith.constant 0 : index
      %121 = vector.load %arg11[%c0_66, %c0_67] : memref<8x32xf32, #tpu.memory_space<vmem>>, vector<8x32xf32>
      %122 = vector.shape_cast %121 : vector<8x32xf32> to vector<1x8x32xf32>
      %cst_68 = arith.constant dense<0.000000e+00> : vector<1xf32>
      %123 = vector.multi_reduction <add>, %122, %cst_68 [1, 2] : vector<1x8x32xf32> to vector<1xf32>
      %124 = vector.shape_cast %123 : vector<1xf32> to vector<1x1x1xf32>
      %125 = vector.extract %124[0, 0, 0] : f32 from vector<1x1x1xf32>
      %126 = tpu.iota {dimensions = array<i32: 0>} : vector<8x128xi32>
      %cst_69 = arith.constant 0.000000e+00 : f32
      %127 = vector.broadcast %cst_69 : f32 to vector<8x128xf32>
      %c0_i32_70 = arith.constant 0 : i32
      %128 = vector.broadcast %c0_i32_70 : i32 to vector<8x128xi32>
      %129 = arith.cmpi eq, %126, %128 : vector<8x128xi32>
      %130 = vector.broadcast %100 : f32 to vector<8x128xf32>
      %131 = arith.select %129, %130, %127 : vector<8x128xi1>, vector<8x128xf32>
      %c1_i32_71 = arith.constant 1 : i32
      %132 = vector.broadcast %c1_i32_71 : i32 to vector<8x128xi32>
      %133 = arith.cmpi eq, %126, %132 : vector<8x128xi32>
      %134 = vector.broadcast %105 : f32 to vector<8x128xf32>
      %135 = arith.select %133, %134, %131 : vector<8x128xi1>, vector<8x128xf32>
      %c2_i32 = arith.constant 2 : i32
      %136 = vector.broadcast %c2_i32 : i32 to vector<8x128xi32>
      %137 = arith.cmpi eq, %126, %136 : vector<8x128xi32>
      %138 = vector.broadcast %110 : f32 to vector<8x128xf32>
      %139 = arith.select %137, %138, %135 : vector<8x128xi1>, vector<8x128xf32>
      %c3_i32 = arith.constant 3 : i32
      %140 = vector.broadcast %c3_i32 : i32 to vector<8x128xi32>
      %141 = arith.cmpi eq, %126, %140 : vector<8x128xi32>
      %142 = vector.broadcast %115 : f32 to vector<8x128xf32>
      %143 = arith.select %141, %142, %139 : vector<8x128xi1>, vector<8x128xf32>
      %c4_i32 = arith.constant 4 : i32
      %144 = vector.broadcast %c4_i32 : i32 to vector<8x128xi32>
      %145 = arith.cmpi eq, %126, %144 : vector<8x128xi32>
      %146 = vector.broadcast %120 : f32 to vector<8x128xf32>
      %147 = arith.select %145, %146, %143 : vector<8x128xi1>, vector<8x128xf32>
      %c5_i32 = arith.constant 5 : i32
      %148 = vector.broadcast %c5_i32 : i32 to vector<8x128xi32>
      %149 = arith.cmpi eq, %126, %148 : vector<8x128xi32>
      %150 = vector.broadcast %125 : f32 to vector<8x128xf32>
      %151 = arith.select %149, %150, %147 : vector<8x128xi1>, vector<8x128xf32>
      %c0_72 = arith.constant 0 : index
      %c0_73 = arith.constant 0 : index
      %152 = vector.load %arg5[%c0_72, %c0_73] : memref<8x128xf32, #tpu.memory_space<vmem>>, vector<8x128xf32>
      tpu.vector_store %arg5[%c0_72, %c0_73], %151 {strides = array<i32>} : memref<8x128xf32, #tpu.memory_space<vmem>>, vector<8x128xf32>,
    } else {
    }
    return
  }
  func.func @transform_0(%arg0: i32, %arg1: i32) -> (i32, i32) {
    %c1_i32 = arith.constant 1 : i32
    %0 = arith.muli %arg0, %c1_i32 : i32
    %1 = arith.addi %0, %arg1 : i32
    %c0_i32 = arith.constant 0 : i32
    %2 = arith.minsi %1, %c0_i32 : i32
    %c0_i32_0 = arith.constant 0 : i32
    %c0_i32_1 = arith.constant 0 : i32
    return %2, %c0_i32_0 : i32, i32
  }
  func.func @transform_1(%arg0: i32, %arg1: i32) -> (i32, i32) {
    %c1_i32 = arith.constant 1 : i32
    %0 = arith.muli %arg0, %c1_i32 : i32
    %1 = arith.addi %0, %arg1 : i32
    %c0_i32 = arith.constant 0 : i32
    %2 = arith.minsi %1, %c0_i32 : i32
    %c0_i32_0 = arith.constant 0 : i32
    %c0_i32_1 = arith.constant 0 : i32
    return %2, %c0_i32_0 : i32, i32
  }
  func.func @transform_2(%arg0: i32, %arg1: i32) -> (i32, i32) {
    %c1_i32 = arith.constant 1 : i32
    %0 = arith.muli %arg0, %c1_i32 : i32
    %1 = arith.addi %0, %arg1 : i32
    %c0_i32 = arith.constant 0 : i32
    %2 = arith.minsi %1, %c0_i32 : i32
    %c0_i32_0 = arith.constant 0 : i32
    %c0_i32_1 = arith.constant 0 : i32
    return %2, %c0_i32_0 : i32, i32
  }
  func.func @transform_3(%arg0: i32, %arg1: i32) -> (i32, i32) {
    %c0_i32 = arith.constant 0 : i32
    %c0_i32_0 = arith.constant 0 : i32
    return %arg0, %c0_i32 : i32, i32
  }
}

</mosaic_0001>

<bundles_post_ra>
// kernel: tpu_custom_call.1
= control target key start
LH: loop header
LB: loop body
LE: loop exit
PB: predicated region body
PF: predicated region fallthrough
CT: control target
= control target key end

     0   :  { %s1000_s16 = smov 126   ;;  %vm115_vm0 = vcmask 7168   ;;  %v1001_v4 = vmov 2   ;;  %v1002_v5 = vmov 0.0   ;;  %s1670_s0 = inlined_call_operand.vmem [shape: f32[64,3], index: 0, kind: input, shape index: {}]   ;;  %s1671_s1 = inlined_call_operand.vmem [shape: f32[64,32], index: 1, kind: input, shape index: {}]   ;;  %s1672_s2 = inlined_call_operand.vmem [shape: f32[64,32], index: 2, kind: input, shape index: {}]   ;;  %s1673_s3 = inlined_call_operand.hbm [shape: f32[8,128], index: 3, kind: output, shape index: {}]  }
   0x1   :  { %v1030_v0 = vld [vmem:[%s1670_s0 + $0x10] sm:$0xff]  ;;  %v1035_v1 = vld [vmem:[%s1670_s0] sm:$0xff]  ;;  %v1044_v2 = vld [vmem:[%s1670_s0 + $0x8] sm:$0xff]  ;;  %953 = vset.pattern.permute.xlu1 %v1001_v4  ;;  %116 = vst.msk [vmem:[#allocation2] sm:$0xff] %vm115_vm0, %v1002_v5  ;;  %952 = vset.pattern.permute.xlu0 %v1001_v4 }
   0x2   :  { %203 = vrot.lane.b32.xlu1 %v1030_v0, %s1000_s16  ;;  %199 = vrot.lane.b32.xlu0 %v1035_v1, %s1000_s16  ;;  %v1049_v3 = vld [vmem:[%s1670_s0 + $0x18] sm:$0xff]  ;;  %117 = vst.msk [vmem:[#allocation3] sm:$0xff] %vm115_vm0, %v1002_v5  ;;  %960 = vrcp.f32 %v1044_v2 }
   0x3   :  { %8 = vsyncpa [#allocation9], 0  ;;  %vm160_vm1 = vcmp.gt.f32.partialorder %v1044_v2, 0.0  ;;  %962 = vrcp.f32 %v1035_v1  ;;  %v1070_v7 = vld [vmem:[%s1670_s0 + $0x28] sm:$0xff]  ;;  %v1075_v8 = vld [vmem:[%s1670_s0 + $0x20] sm:$0xff]  ;;  %vm162_vm2 = vcmp.gt.f32.partialorder %v1049_v3, 0.0 }
   0x4   :  { %v910_v6 = vsel %vm160_vm1, 1.0, %v1002_v5  ;;  %964 = vrcp.f32 %v1030_v0  ;;  %vm159_vm3 = vcmp.gt.f32.partialorder %v1035_v1, 0.0  ;;  %vm161_vm4 = vcmp.gt.f32.partialorder %v1030_v0, 0.0  ;;  %v1098_v13 = vld [vmem:[%s1670_s0 + $0x38] sm:$0xff]  ;;  %v1103_v14 = vld [vmem:[%s1670_s0 + $0x30] sm:$0xff]  ;;  %s1004_s0 = smov 127  }
   0x5   :  { %v636_v9 = vsel %vm115_vm0, %v910_v6, 0.0  ;;  %v912_v10 = vsel %vm162_vm2, 1.0, %v1002_v5  ;;  %v909_v11 = vsel %vm159_vm3, 1.0, %v1002_v5  ;;  %v911_v12 = vsel %vm161_vm4, 1.0, %v1002_v5  ;;  %s1006_s9 = smov [#allocation8]  }
   0x6   :  { %205 = vrot.lane.b32.xlu1 %v1049_v3, %s1000_s16  ;;  %201 = vrot.lane.b32.xlu0 %v1044_v2, %s1000_s16  ;;  %vm163_vm5 = vcmp.gt.f32.partialorder %v1075_v8, 0.0  ;;  %v635_v15 = vsel %vm115_vm0, %v909_v11, 0.0  ;;  %v638_v16 = vsel %vm115_vm0, %v911_v12, 0.0  ;;  %v640_v19 = vsel %vm115_vm0, %v912_v10, 0.0  ;;  %s875_s10 = sshll.u32 %s1006_s9, 4  ;;  %s876_s10 = int_to_ptr.vmem [resolvable:$true] %s875_s10 }
   0x7   :  { %v913_v17 = vsel %vm163_vm5, 1.0, %v1002_v5  ;;  %v637_v18 = vadd.f32 %v636_v9, %v635_v15  ;;  %vm164_vm6 = vcmp.gt.f32.partialorder %v1070_v7, 0.0  ;;  %966 = vrcp.f32 %v1049_v3  ;;  %s976_s12 = scalar_lea.vmem %s876_s10, 128  ;;  %p981_p1 = scmp.lt.s32.totalorder %s876_s10, %s876_s10 }
   0x8   :  { %v914_v21 = vsel %vm164_vm6, 1.0, %v1002_v5  ;;  %v642_v24 = vsel %vm115_vm0, %v913_v17, 0.0  ;;  %vm165_vm7 = vcmp.gt.f32.partialorder %v1103_v14, 0.0  ;;  %968 = vrcp.f32 %v1070_v7  ;;  %p977_p0 = scmp.ne.s32.totalorder %s876_s10, %s976_s12  ;;  %p982_p2 = scmp.lt.s32.totalorder %s976_s12, %s976_s12 }
   0x9   :  { %v639_v22 = vadd.f32 %v638_v16, %v637_v18  ;;  %v915_v25 = vsel %vm165_vm7, 1.0, %v1002_v5  ;;  %v644_v27 = vsel %vm115_vm0, %v914_v21, 0.0  ;;  %vm1674_vm8 = vcmp.gt.f32.partialorder %v1098_v13, 0.0  ;;  %v626_v37 = vld [vmem:[#allocation3] sm:$0xff] }
   0xa   :  { %209 = vrot.lane.b32.xlu1 %v1070_v7, %s1000_s16  ;;  %207 = vrot.lane.b32.xlu0 %v1075_v8, %s1000_s16  ;;  %v916_v29 = vsel %vm1674_vm8, 1.0, %v1002_v5  ;;  %v646_v31 = vsel %vm115_vm0, %v915_v25, 0.0  ;;  %v1003_v32 = vmov 0   ;;  %970 = vrcp.f32 %v1103_v14  ;;  %p983_p3 = por %p982_p2, %p981_p1 }
   0xb   :  { %v641_v26 = vadd.f32 %v640_v19, %v639_v22  ;;  %v392_v33 = vsel %vm160_vm1, 1, %v1003_v32  ;;  %v648_v35 = vsel %vm115_vm0, %v916_v29, 0.0  ;;  %972 = vrcp.f32 %v1075_v8 }
   0xc   :  { %v961_v20 = vpop.eup %960  ;;  %974 = vrcp.f32 %v1098_v13  ;;  %v391_v45 = vsel %vm159_vm3, 1, %v1003_v32  ;;  %v394_v46 = vsel %vm162_vm2, 1, %v1003_v32  ;;  %v393_v47 = vsel %vm161_vm4, 1, %v1003_v32  ;;  %p984_p4 = pnand %p983_p3, %p977_p0 }
   0xd   :  { %v963_v23 = vpop.eup %962  ;;  %v643_v28 = vadd.f32 %v642_v24, %v641_v26  ;;  %v395_v48 = vsel %vm163_vm5, 1, %v1003_v32  ;;  %v396_v49 = vsel %vm164_vm6, 1, %v1003_v32  ;;  %v397_v50 = vsel %vm165_vm7, 1, %v1003_v32 }
   0xe   :  { %213 = vrot.lane.b32.xlu1 %v1098_v13, %s1000_s16  ;;  %211 = vrot.lane.b32.xlu0 %v1103_v14, %s1000_s16  ;;  %v965_v30 = vpop.eup %964  ;;  %v901_v51 = vadd.f32 -0.05, %v1035_v1  ;;  %v231_v52 = vadd.f32 0.05, %v1035_v1  ;;  %v902_v56 = vadd.f32 -0.05, %v1044_v2 }
   0xf   :  { %v645_v34 = vadd.f32 %v644_v27, %v643_v28  ;;  %v232_v57 = vadd.f32 0.05, %v1044_v2  ;;  %v904_v58 = vadd.f32 -0.05, %v1049_v3  ;;  %v903_v61 = vadd.f32 -0.05, %v1030_v0 }
  0x10   :  { %vm118_vm9 = vcmask 261120   ;;  %v235_v10 = vadd.f32 0.05, %v1075_v8  ;;  %v906_v16 = vadd.f32 -0.05, %v1070_v7  ;;  %vm1005_vm14 = vmmov 1  }
  0x11   :  { %v647_v36 = vadd.f32 %v646_v31, %v645_v34  ;;  %v967_v39 = vpop.eup %966  ;;  %119 = vst.msk [vmem:[#allocation4] sm:$0xff] %vm118_vm9, %v1002_v5  ;;  %120 = vst.msk [vmem:[#allocation5] sm:$0xff] %vm118_vm9, %v1002_v5  ;;  %v233_v22 = vadd.f32 0.05, %v1030_v0  ;;  %v907_v26 = vadd.f32 -0.05, %v1103_v14 }
  0x12   :  { %446 = vperm.xlu1 %953, %v961_v20   ;;  %441 = vperm.xlu0 %952, %v963_v23   ;;  %v969_v41 = vpop.eup %968  ;;  %121 = vst.msk [vmem:[#allocation6] sm:$0xff] %vm118_vm9, %v1002_v5  ;;  %122 = vst.msk [vmem:[#allocation7] sm:$0xff] %vm118_vm9, %v1002_v5  ;;  %v234_v29 = vadd.f32 0.05, %v1049_v3 }
  0x13   :  { %v649_v38 = vadd.f32 %v648_v35, %v647_v36  ;;  %v905_v36 = vadd.f32 -0.05, %v1075_v8 }
  0x14   :  { %v971_v42 = vpop.eup %970 }
  0x15   :  { %v650_v40 = vadd.f32 %v649_v38, %v626_v37  ;;  %v973_v43 = vpop.eup %972 }
  0x16   :  { %954 = vset.pattern.permute.xlu1 %v1003_v32  ;;  %451 = vperm.xlu0 %952, %v965_v30   ;;  %v975_v44 = vpop.eup %974 }
  0x17   :  { %403 = vperm.xlu1 %954, %v392_v33   ;;  %651 = vst.msk [vmem:[#allocation3] sm:$0xff] %vm115_vm0, %v650_v40  ;;  %v908_v33 = vadd.f32 -0.05, %v1098_v13 }
  0x1a   :  { %562 = vrot.lane.b32.xlu0 %v1044_v2, %s1004_s0 }
  0x1b   :  { %955 = vset.pattern.permute.xlu1 %v1001_v4 }
  0x1c   :  { %456 = vperm.xlu1 %955, %v967_v39  }
  0x1e   :  { %466 = vperm.xlu0 %952, %v969_v41   ;;  %v236_v41 = vadd.f32 0.05, %v1070_v7 }
  0x20   :  { %956 = vset.pattern.permute.xlu1 %v1003_v32 }
  0x21   :  { %524 = vperm.xlu1 %956, %v1044_v2  }
  0x22   :  { %471 = vperm.xlu0 %952, %v971_v42  }
  0x25   :  { %957 = vset.pattern.permute.xlu1 %v1001_v4 }
  0x26   :  { %461 = vperm.xlu1 %957, %v973_v43   ;;  %476 = vperm.xlu0 %952, %v975_v44  }
  0x2a   :  { %560 = vrot.lane.b32.xlu1 %v1035_v1, %s1004_s0  ;;  %959 = vset.pattern.permute.xlu0 %v1003_v32 }
  0x2b   :  { %958 = vset.pattern.permute.xlu1 %v1003_v32  ;;  %400 = vperm.xlu0 %959, %v391_v45   ;;  %v237_v45 = vadd.f32 0.05, %v1103_v14 }
  0x2e   :  { %409 = vperm.xlu1 %958, %v394_v46  }
  0x2f   :  { %520 = vperm.xlu0 %959, %v1035_v1  }
  0x32   :  { %532 = vperm.xlu1 %958, %v1049_v3  }
  0x33   :  { %406 = vperm.xlu0 %959, %v393_v47  }
  0x36   :  { %564 = vrot.lane.b32.xlu1 %v1030_v0, %s1004_s0 }
  0x37   :  { %528 = vperm.xlu0 %959, %v1030_v0  }
  0x3a   :  { %412 = vperm.xlu1 %958, %v395_v48  }
  0x3e   :  { %536 = vperm.xlu1 %958, %v1075_v8  }
  0x42   :  { %566 = vrot.lane.b32.xlu1 %v1049_v3, %s1004_s0 }
  0x46   :  { %415 = vperm.xlu1 %958, %v396_v49   ;;  %v238_v49 = vadd.f32 0.05, %v1098_v13 }
  0x4a   :  { %540 = vperm.xlu1 %958, %v1070_v7  }
  0x4e   :  { %568 = vrot.lane.b32.xlu1 %v1075_v8, %s1004_s0 }
  0x52   :  { %418 = vperm.xlu1 %958, %v397_v50  }
  0x74   :  { %v200_v53 = vpop.permute.xlu0 %199  ;;  %v204_v54 = vpop.permute.xlu1 %203 }
  0x75   :  { %v223_v55 = vmul.f32 %v901_v51, %v200_v53  ;;  %v239_v59 = vmul.f32 %v231_v52, %v200_v53  ;;  %v225_v17 = vmul.f32 %v903_v61, %v204_v54  ;;  %v241_v28 = vmul.f32 %v233_v22, %v204_v54  ;;  %v1240_v52 = vld [vmem:[%s1671_s1 + $0x8] sm:$0xff] }
  0x76   :  { %v398_v51 = vsel %vm1674_vm8, 1, %v1003_v32 }
  0x77   :  { %v247_v60 = vsel %vm159_vm3, %v223_v55, -inf  ;;  %v255_v12 = vsel %vm159_vm3, %v239_v59, inf  ;;  %v249_v25 = vsel %vm161_vm4, %v225_v17, -inf  ;;  %v257_v37 = vsel %vm161_vm4, %v241_v28, inf }
  0x78   :  { %v202_v62 = vpop.permute.xlu0 %201  ;;  %281 = vperm.xlu1 %958, %v247_v60   ;;  %v206_v63 = vpop.permute.xlu1 %205 }
  0x79   :  { %v224_v4 = vmul.f32 %v902_v56, %v202_v62  ;;  %v240_v6 = vmul.f32 %v232_v57, %v202_v62  ;;  %v226_v9 = vmul.f32 %v904_v58, %v206_v63  ;;  %v242_v35 = vmul.f32 %v234_v29, %v206_v63  ;;  %v1250_v57 = vld [vmem:[%s1672_s2 + $0x8] sm:$0xff] }
  0x7b   :  { %v248_v11 = vsel %vm160_vm1, %v224_v4, -inf  ;;  %v250_v19 = vsel %vm162_vm2, %v226_v9, -inf  ;;  %v256_v20 = vsel %vm160_vm1, %v240_v6, inf  ;;  %v258_v42 = vsel %vm162_vm2, %v242_v35, inf  ;;  %v1265_v6 = vld [vmem:[%s1671_s1 + $0x18] sm:$0xff] }
  0x7c   :  { %286 = vperm.xlu0 %959, %v248_v11   ;;  %329 = vperm.xlu1 %958, %v255_v12   ;;  %v208_v15 = vpop.permute.xlu0 %207  ;;  %v210_v21 = vpop.permute.xlu1 %209 }
  0x7d   :  { %v243_v18 = vmul.f32 %v235_v10, %v208_v15  ;;  %v228_v23 = vmul.f32 %v906_v16, %v210_v21  ;;  %v227_v40 = vmul.f32 %v905_v36, %v208_v15  ;;  %v244_v44 = vmul.f32 %v236_v41, %v210_v21  ;;  %v1275_v16 = vld [vmem:[%s1672_s2 + $0x18] sm:$0xff] }
  0x7f   :  { %v259_v24 = vsel %vm163_vm5, %v243_v18, inf  ;;  %v252_v31 = vsel %vm164_vm6, %v228_v23, -inf  ;;  %v251_v46 = vsel %vm163_vm5, %v227_v40, -inf  ;;  %v260_v50 = vsel %vm164_vm6, %v244_v44, inf }
  0x80   :  { %296 = vperm.xlu0 %959, %v250_v19   ;;  %334 = vperm.xlu1 %958, %v256_v20   ;;  %v212_v27 = vpop.permute.xlu0 %211  ;;  %v214_v34 = vpop.permute.xlu1 %213 }
  0x81   :  { %v229_v30 = vmul.f32 %v907_v26, %v212_v27  ;;  %v230_v38 = vmul.f32 %v908_v33, %v214_v34  ;;  %v245_v48 = vmul.f32 %v237_v45, %v212_v27  ;;  %v246_v54 = vmul.f32 %v238_v49, %v214_v34  ;;  %v795_v34 = vld [vmem:[#allocation3] sm:$0xff]  ;;  %v1326_v49 = vld [vmem:[%s1671_s1 + $0x10] sm:$0xff] }
  0x83   :  { %v253_v39 = vsel %vm165_vm7, %v229_v30, -inf  ;;  %v254_v43 = vsel %vm1674_vm8, %v230_v38, -inf  ;;  %v261_v55 = vsel %vm165_vm7, %v245_v48, inf  ;;  %v262_v32 = vsel %vm1674_vm8, %v246_v54, inf  ;;  %v1321_v48 = vld [vmem:[%s1671_s1 + $0x20] sm:$0xff] }
  0x84   :  { %349 = vperm.xlu0 %959, %v259_v24   ;;  %291 = vperm.xlu1 %958, %v249_v25  }
  0x88   :  { %306 = vperm.xlu0 %959, %v252_v31   ;;  %339 = vperm.xlu1 %958, %v257_v37  }
  0x8c   :  { %311 = vperm.xlu0 %959, %v253_v39   ;;  %344 = vperm.xlu1 %958, %v258_v42  }
  0x90   :  { %316 = vperm.xlu0 %959, %v254_v43   ;;  %301 = vperm.xlu1 %958, %v251_v46  }
  0x91   :  { %v447_v47 = vpop.permute.xlu1 %446  ;;  %v442_v59 = vpop.permute.xlu0 %441 }
  0x92   :  { %v480_v56 = vmul.f32 %v447_v47, %v1240_v52  ;;  %v1316_v47 = vld [vmem:[%s1671_s1] sm:$0xff] }
  0x94   :  { %544 = vperm.xlu0 %959, %v1103_v14   ;;  %354 = vperm.xlu1 %958, %v260_v50   ;;  %v512_v60 = vadd.f32 %v480_v56, %v1250_v57  ;;  %v479_v50 = vmul.f32 %v442_v59, %v1316_v47  ;;  %v488_v56 = vsub.f32 0.05, %v1250_v57 }
  0x95   :  { %v452_v63 = vpop.permute.xlu0 %451 }
  0x96   :  { %v1242_v53 = vpop.permute.xlu1 %403  ;;  %v481_v59 = vmul.f32 %v452_v63, %v1326_v49 }
  0x98   :  { %421 = vperm.xlu0 %959, %v398_v51   ;;  %359 = vperm.xlu1 %958, %v261_v55   ;;  %v1332_v51 = vld [vmem:[%s1671_s1 + $0x28] sm:$0xff] }
  0x99   :  { %v563_v9 = vpop.permute.xlu0 %562 }
  0x9a   :  { %v585_v15 = vsub.f32 %v1044_v2, %v563_v9  ;;  %v796_v2 = vsel %vm115_vm0, %v795_v34, 0.0  ;;  %v276_v9 = vld [vmem:[%s1672_s2 + $0x28] sm:$0xff] }
  0x9b   :  { %v457_v58 = vpop.permute.xlu1 %456 }
  0x9c   :  { %364 = vperm.xlu1 %958, %v262_v32   ;;  %572 = vrot.lane.b32.xlu0 %v1103_v14, %s1004_s0  ;;  %v482_v11 = vmul.f32 %v457_v58, %v1265_v6  ;;  %v593_v20 = vand.u32 2147483647, %v585_v15  ;;  %v271_v32 = vld [vmem:[%s1672_s2] sm:$0xff] }
  0x9d   :  { %v467_v36 = vpop.permute.xlu0 %466  ;;  %v511_v15 = vadd.f32 %v479_v50, %v271_v32 }
  0x9e   :  { %v514_v19 = vadd.f32 %v482_v11, %v1275_v16  ;;  %v601_v24 = vsel %vm160_vm1, %v593_v20, 0.0  ;;  %v484_v11 = vmul.f32 %v467_v36, %v1332_v51  ;;  %v1359_v20 = vld [vmem:[%s1672_s2 + $0x38] sm:$0xff]  ;;  %vm424_vm1 = vcmp.eq.s32.totalorder %v1242_v53, 1 }
  0x9f   :  { %v610_v27 = vsel %vm115_vm0, %v601_v24, 0.0  ;;  %v494_v24 = vsub.f32 0.05, %v1359_v20 }
  0xa0   :  { %570 = vrot.lane.b32.xlu1 %v1070_v7, %s1004_s0  ;;  %v525_v61 = vpop.permute.xlu1 %524 }
  0xa1   :  { %v1259_v62 = vsub.f32 %v512_v60, %v525_v61  ;;  %v472_v38 = vpop.permute.xlu0 %471  ;;  %v490_v60 = vsub.f32 0.05, %v1275_v16  ;;  %v275_v61 = vld [vmem:[%s1672_s2 + $0x20] sm:$0xff] }
  0xa2   :  { %v491_v57 = vsub.f32 0.05, %v275_v61 }
  0xa4   :  { %548 = vperm.xlu1 %958, %v1098_v13  }
  0xa5   :  { %v462_v4 = vpop.permute.xlu1 %461  ;;  %v1301_v40 = vpop.permute.xlu0 %476 }
  0xa6   :  { %v483_v58 = vmul.f32 %v462_v4, %v1321_v48  ;;  %v273_v4 = vld [vmem:[%s1672_s2 + $0x10] sm:$0xff] }
  0xa7   :  { %v489_v16 = vsub.f32 0.05, %v273_v4 }
  0xa8   :  { %574 = vrot.lane.b32.xlu1 %v1098_v13, %s1004_s0 }
  0xa9   :  { %v561_v10 = vpop.permute.xlu1 %560 }
  0xaa   :  { %v584_v12 = vsub.f32 %v1035_v1, %v561_v10  ;;  %v1305_v41 = vpop.permute.xlu0 %400  ;;  %v487_v10 = vsub.f32 0.05, %v271_v32 }
  0xac   :  { %v592_v18 = vand.u32 2147483647, %v584_v12  ;;  %v492_v12 = vsub.f32 0.05, %v276_v9 }
  0xad   :  { %v1277_v17 = vpop.permute.xlu1 %409 }
  0xae   :  { %v600_v22 = vsel %vm159_vm3, %v592_v18, 0.0  ;;  %v521_v43 = vpop.permute.xlu0 %520  ;;  %v1384_v32 = vmax.f32 %v492_v12, 0.0  ;;  %vm423_vm3 = vcmp.eq.s32.totalorder %v1305_v41, 1 }
  0xaf   :  { %v609_v25 = vsel %vm115_vm0, %v600_v22, 0.0  ;;  %v551_v34 = vsub.f32 %v511_v15, %v521_v43  ;;  %v1394_v43 = vmax.f32 %v494_v24, 0.0 }
  0xb0   :  { %v611_v30 = vadd.f32 %v610_v27, %v609_v25  ;;  %v515_v25 = vadd.f32 %v483_v58, %v275_v61  ;;  %v495_v27 = vmax.f32 %v487_v10, 0.0  ;;  %v1396_v58 = vmax.f32 %v491_v57, 0.0 }
  0xb1   :  { %v533_v21 = vpop.permute.xlu1 %532 }
  0xb2   :  { %v1282_v23 = vsub.f32 %v514_v19, %v533_v21  ;;  %v1309_v45 = vpop.permute.xlu0 %406  ;;  %v277_v19 = vld [vmem:[%s1672_s2 + $0x30] sm:$0xff] }
  0xb3   :  { %v1364_v21 = vld [vmem:[%s1671_s1 + $0x30] sm:$0xff]  ;;  %v493_v22 = vsub.f32 0.05, %v277_v19 }
  0xb5   :  { %v565_v26 = vpop.permute.xlu1 %564 }
  0xb6   :  { %v586_v28 = vsub.f32 %v1030_v0, %v565_v26  ;;  %v529_v54 = vpop.permute.xlu0 %528  ;;  %v513_v26 = vadd.f32 %v481_v59, %v273_v4 }
  0xb8   :  { %v594_v29 = vand.u32 2147483647, %v586_v28  ;;  %v496_v28 = vmax.f32 %v488_v56, 0.0  ;;  %v497_v56 = vmax.f32 %v489_v16, 0.0  ;;  %v553_v59 = vsub.f32 %v513_v26, %v529_v54 }
  0xb9   :  { %v1295_v35 = vpop.permute.xlu1 %412 }
  0xba   :  { %v602_v31 = vsel %vm161_vm4, %v594_v29, 0.0 }
  0xbb   :  { %v612_v1 = vsel %vm115_vm0, %v602_v31, 0.0  ;;  %v498_v31 = vmax.f32 %v490_v60, 0.0 }
  0xbc   :  { %v1292_v33 = vadd.f32 %v612_v1, %v611_v30  ;;  %v516_v30 = vadd.f32 %v484_v11, %v276_v9  ;;  %v485_v1 = vmul.f32 %v472_v38, %v1364_v21  ;;  %v1392_v38 = vmax.f32 %v493_v22, 0.0 }
  0xbd   :  { %v1297_v37 = vpop.permute.xlu1 %536 }
  0xbe   :  { %v555_v60 = vsub.f32 %v515_v25, %v1297_v37  ;;  %v749_v37 = vmul.f32 %v1259_v62, %v1259_v62  ;;  %v1422_v4 = vadd.f32 %v485_v1, %v277_v19 }
  0xc0   :  { %v1434_v16 = vmul.f32 %v555_v60, %v555_v60 }
  0xc1   :  { %v1299_v39 = vpop.permute.xlu1 %566 }
  0xc2   :  { %v587_v29 = vsub.f32 %v1049_v3, %v1299_v39  ;;  %v1390_v39 = vld [vmem:[%s1671_s1 + $0x38] sm:$0xff] }
  0xc3   :  { %v1416_v41 = vmul.f32 %v1301_v40, %v1390_v39  ;;  %v1432_v40 = vmul.f32 %v1282_v23, %v1282_v23 }
  0xc4   :  { %v595_v9 = vand.u32 2147483647, %v587_v29 }
  0xc5   :  { %v1303_v0 = vpop.permute.xlu1 %415 }
  0xc9   :  { %v541_v42 = vpop.permute.xlu1 %540 }
  0xca   :  { %v556_v10 = vsub.f32 %v516_v30, %v541_v42  ;;  %v748_v42 = vmul.f32 %v551_v34, %v551_v34 }
  0xcc   :  { %797 = vadd.xlane.f32.xlu1 %v796_v2 }
  0xcd   :  { %v1307_v44 = vpop.permute.xlu1 %568 }
  0xd1   :  { %v1311_v46 = vpop.permute.xlu1 %418 }
  0xf7   :  { %v1334_v55 = vpop.permute.xlu1 %281 }
  0xf8   :  { %vm319_vm10 = vcmp.lt.f32.partialorder %v1316_v47, %v1334_v55 }
  0xf9   :  { %v503_v11 = vsel %vm319_vm10, %v495_v27, 0.0  ;;  %v917_v23 = vsel %vm319_vm10, 1.0, %v1002_v5 }
  0xfa   :  { %v722_v19 = vmul.f32 %v503_v11, %v503_v11  ;;  %v670_v30 = vsel %vm118_vm9, %v917_v23, 0.0 }
  0xfb   :  { %v287_v63 = vpop.permute.xlu0 %286  ;;  %v330_v18 = vpop.permute.xlu1 %329 }
  0xfc   :  { %vm367_vm11 = vcmp.gt.f32.partialorder %v1316_v47, %v330_v18  ;;  %vm320_vm13 = vcmp.lt.f32.partialorder %v1240_v52, %v287_v63  ;;  %v750_v18 = vmul.f32 %v553_v59, %v553_v59  ;;  %v1447_v63 = vmul.f32 %v556_v10, %v556_v10 }
  0xfd   :  { %vm375_vm12 = vmor %vm319_vm10, %vm367_vm11  ;;  %v504_v61 = vsel %vm320_vm13, %v496_v28, 0.0  ;;  %v918_v15 = vsel %vm320_vm13, 1.0, %v1002_v5  ;;  %v588_v47 = vsub.f32 %v1075_v8, %v1307_v44  ;;  %v730_v1 = vsel %vm118_vm9, %v722_v19, 0.0 }
  0xfe   :  { %vm1378_vm15 = vmxor %vm375_vm12, %vm1005_vm14  ;;  %v723_v62 = vmul.f32 %v504_v61, %v504_v61  ;;  %v671_v24 = vsel %vm118_vm9, %v918_v15, 0.0 }
  0xff   :  { %v1382_v36 = vpop.permute.xlu0 %296  ;;  %v335_v50 = vpop.permute.xlu1 %334  ;;  %vm1407_vm4 = vmand %vm423_vm3, %vm1378_vm15  ;;  %vm425_vm15 = vcmp.eq.s32.totalorder %v1309_v45, 1  ;;  %v672_v2 = vadd.f32 %v671_v24, %v670_v30 }
 0x100   :  { %vm368_vm11 = vcmp.gt.f32.partialorder %v1240_v52, %v335_v50  ;;  %v1445_v52 = vsel %vm162_vm2, %v595_v9, 0.0  ;;  %v731_v55 = vsel %vm118_vm9, %v723_v62, 0.0  ;;  %v925_v28 = vsel %vm1407_vm4, 1.0, %v1002_v5 }
 0x101   :  { %vm376_vm12 = vmor %vm320_vm13, %vm368_vm11  ;;  %vm426_vm13 = vcmp.eq.s32.totalorder %v1277_v17, 1  ;;  %v756_v29 = vsel %vm1407_vm4, %v748_v42, 0.0  ;;  %v732_v59 = vadd.f32 %v731_v55, %v730_v1  ;;  %v704_v61 = vsel %vm118_vm9, %v925_v28, 0.0 }
 0x102   :  { %vm384_vm3 = vmxor %vm376_vm12, %vm1005_vm14  ;;  %v764_v9 = vsel %vm118_vm9, %v756_v29, 0.0 }
 0x103   :  { %v1420_v54 = vpop.permute.xlu0 %349  ;;  %v292_v57 = vpop.permute.xlu1 %291  ;;  %vm1438_vm11 = vmand %vm424_vm1, %vm384_vm3  ;;  %vm322_vm1 = vcmp.lt.f32.partialorder %v1265_v6, %v1382_v36 }
 0x104   :  { %vm321_vm8 = vcmp.lt.f32.partialorder %v1326_v49, %v292_v57  ;;  %v757_v53 = vsel %vm1438_vm11, %v749_v37, 0.0  ;;  %v926_v3 = vsel %vm1438_vm11, 1.0, %v1002_v5  ;;  %v506_v50 = vsel %vm322_vm1, %v498_v31, 0.0 }
 0x105   :  { %v505_v25 = vsel %vm321_vm8, %v497_v56, 0.0  ;;  %v919_v34 = vsel %vm321_vm8, 1.0, %v1002_v5  ;;  %v705_v56 = vsel %vm118_vm9, %v926_v3, 0.0  ;;  %v765_v10 = vsel %vm118_vm9, %v757_v53, 0.0 }
 0x106   :  { %v724_v60 = vmul.f32 %v505_v25, %v505_v25  ;;  %v920_v31 = vsel %vm322_vm1, 1.0, %v1002_v5  ;;  %vm427_vm11 = vcmp.eq.s32.totalorder %v1295_v35, 1  ;;  %v725_v37 = vmul.f32 %v506_v50, %v506_v50 }
 0x107   :  { %v1463_v26 = vpop.permute.xlu0 %306  ;;  %v340_v27 = vpop.permute.xlu1 %339  ;;  %v706_v42 = vadd.f32 %v705_v56, %v704_v61  ;;  %v766_v62 = vadd.f32 %v765_v10, %v764_v9  ;;  %v675_v23 = vsel %vm118_vm9, %v920_v31, 0.0 }
 0x108   :  { %vm369_vm2 = vcmp.gt.f32.partialorder %v1326_v49, %v340_v27  ;;  %v673_v49 = vsel %vm118_vm9, %v919_v34, 0.0  ;;  %v733_v19 = vsel %vm118_vm9, %v724_v60, 0.0  ;;  %v735_v29 = vsel %vm118_vm9, %v725_v37, 0.0 }
 0x109   :  { %vm377_vm10 = vmor %vm321_vm8, %vm369_vm2  ;;  %vm324_vm8 = vcmp.lt.f32.partialorder %v1332_v51, %v1463_v26  ;;  %v674_v53 = vadd.f32 %v673_v49, %v672_v2 }
 0x10a   :  { %vm385_vm4 = vmxor %vm377_vm10, %vm1005_vm14  ;;  %vm428_vm10 = vcmp.eq.s32.totalorder %v1303_v0, 1  ;;  %v596_v0 = vand.u32 2147483647, %v588_v47 }
 0x10b   :  { %v1489_v11 = vpop.permute.xlu0 %311  ;;  %v345_v12 = vpop.permute.xlu1 %344  ;;  %vm433_vm12 = vmand %vm425_vm15, %vm385_vm4 }
 0x10c   :  { %vm370_vm3 = vcmp.gt.f32.partialorder %v1265_v6, %v345_v12  ;;  %v927_v57 = vsel %vm433_vm12, 1.0, %v1002_v5  ;;  %v758_v15 = vsel %vm433_vm12, %v750_v18, 0.0  ;;  %v508_v18 = vsel %vm324_vm8, %v1384_v32, 0.0 }
 0x10d   :  { %vm378_vm2 = vmor %vm322_vm1, %vm370_vm3  ;;  %v707_v22 = vsel %vm118_vm9, %v927_v57, 0.0  ;;  %v767_v45 = vsel %vm118_vm9, %v758_v15, 0.0  ;;  %v922_v6 = vsel %vm324_vm8, 1.0, %v1002_v5  ;;  %v734_v32 = vadd.f32 %v733_v19, %v732_v59 }
 0x10e   :  { %vm386_vm15 = vmxor %vm378_vm2, %vm1005_vm14  ;;  %v708_v3 = vadd.f32 %v707_v22, %v706_v42  ;;  %v768_v25 = vadd.f32 %v767_v45, %v766_v62  ;;  %vm325_vm4 = vcmp.lt.f32.partialorder %v1364_v21, %v1489_v11  ;;  %v727_v30 = vmul.f32 %v508_v18, %v508_v18 }
 0x10f   :  { %vm434_vm1 = vmand %vm426_vm13, %vm386_vm15  ;;  %v1521_v36 = vpop.permute.xlu0 %316  ;;  %v302_v24 = vpop.permute.xlu1 %301  ;;  %vm371_vm13 = vcmp.gt.f32.partialorder %v1321_v48, %v1420_v54  ;;  %v679_v2 = vsel %vm118_vm9, %v922_v6, 0.0  ;;  %v509_v56 = vsel %vm325_vm4, %v1392_v38, 0.0  ;;  %v676_v54 = vadd.f32 %v675_v23, %v674_v53 }
 0x110   :  { %v928_v27 = vsel %vm434_vm1, 1.0, %v1002_v5  ;;  %v759_v55 = vsel %vm434_vm1, %v1432_v40, 0.0  ;;  %vm326_vm12 = vcmp.lt.f32.partialorder %v1390_v39, %v1521_v36  ;;  %vm323_vm3 = vcmp.lt.f32.partialorder %v1321_v48, %v302_v24 }
 0x111   :  { %v709_v28 = vsel %vm118_vm9, %v928_v27, 0.0  ;;  %v769_v17 = vsel %vm118_vm9, %v759_v55, 0.0  ;;  %vm379_vm2 = vmor %vm323_vm3, %vm371_vm13  ;;  %v507_v60 = vsel %vm323_vm3, %v1396_v58, 0.0  ;;  %v921_v59 = vsel %vm323_vm3, 1.0, %v1002_v5 }
 0x112   :  { %v710_v1 = vadd.f32 %v709_v28, %v708_v3  ;;  %v770_v34 = vadd.f32 %v769_v17, %v768_v25  ;;  %vm387_vm15 = vmxor %vm379_vm2, %vm1005_vm14  ;;  %v677_v61 = vsel %vm118_vm9, %v921_v59, 0.0  ;;  %v726_v9 = vmul.f32 %v507_v60, %v507_v60  ;;  %v652_v3 = vld [vmem:[#allocation4] sm:$0xff]  ;;  %v721_v28 = vld [vmem:[#allocation6] sm:$0xff] }
 0x113   :  { %v545_v40 = vpop.permute.xlu0 %544  ;;  %v355_v50 = vpop.permute.xlu1 %354  ;;  %v736_v10 = vadd.f32 %v735_v29, %v734_v32  ;;  %v739_v48 = vsel %vm118_vm9, %v727_v30, 0.0  ;;  %v923_v38 = vsel %vm325_vm4, 1.0, %v1002_v5  ;;  %v510_v58 = vsel %vm326_vm12, %v1394_v43, 0.0  ;;  %vm435_vm13 = vmand %vm427_vm11, %vm387_vm15 }
 0x114   :  { %vm372_vm1 = vcmp.gt.f32.partialorder %v1332_v51, %v355_v50  ;;  %v678_v12 = vadd.f32 %v677_v61, %v676_v54  ;;  %v728_v31 = vmul.f32 %v509_v56, %v509_v56  ;;  %v929_v49 = vsel %vm435_vm13, 1.0, %v1002_v5  ;;  %v687_v54 = vld [vmem:[#allocation5] sm:$0xff]  ;;  %v747_v51 = vld [vmem:[#allocation7] sm:$0xff] }
 0x115   :  { %v737_v37 = vsel %vm118_vm9, %v726_v9, 0.0  ;;  %v760_v42 = vsel %vm435_vm13, %v1434_v16, 0.0  ;;  %vm380_vm3 = vmor %vm324_vm8, %vm372_vm1  ;;  %v924_v35 = vsel %vm326_vm12, 1.0, %v1002_v5  ;;  %v681_v22 = vsel %vm118_vm9, %v923_v38, 0.0 }
 0x116   :  { %v680_v43 = vadd.f32 %v679_v2, %v678_v12  ;;  %v738_v62 = vadd.f32 %v737_v37, %v736_v10  ;;  %v771_v19 = vsel %vm118_vm9, %v760_v42, 0.0  ;;  %vm388_vm11 = vmxor %vm380_vm3, %vm1005_vm14  ;;  %v729_v16 = vmul.f32 %v510_v58, %v510_v58 }
 0x117   :  { %v422_v57 = vpop.permute.xlu0 %421  ;;  %v360_v15 = vpop.permute.xlu1 %359  ;;  %v1570_v45 = vadd.f32 %v771_v19, %v770_v34  ;;  %vm1574_vm8 = vmand %vm428_vm10, %vm388_vm11  ;;  %v711_v23 = vsel %vm118_vm9, %v929_v49, 0.0  ;;  %vm429_vm10 = vcmp.eq.s32.totalorder %v1311_v46, 1  ;;  %v741_v6 = vsel %vm118_vm9, %v728_v31, 0.0 }
 0x118   :  { %vm373_vm2 = vcmp.gt.f32.partialorder %v1364_v21, %v360_v15  ;;  %v682_v26 = vadd.f32 %v681_v22, %v680_v43  ;;  %v740_v53 = vadd.f32 %v739_v48, %v738_v62  ;;  %v930_v18 = vsel %vm1574_vm8, 1.0, %v1002_v5 }
 0x119   :  { %vm381_vm15 = vmor %vm325_vm4, %vm373_vm2  ;;  %v683_v24 = vsel %vm118_vm9, %v924_v35, 0.0  ;;  %v557_v21 = vsub.f32 %v1422_v4, %v545_v40  ;;  %v713_v11 = vsel %vm118_vm9, %v930_v18, 0.0  ;;  %v743_v46 = vsel %vm118_vm9, %v729_v16, 0.0 }
 0x11a   :  { %vm389_vm1 = vmxor %vm381_vm15, %vm1005_vm14  ;;  %v684_v55 = vadd.f32 %v683_v24, %v682_v26  ;;  %v742_v32 = vadd.f32 %v741_v6, %v740_v53  ;;  %v712_v47 = vadd.f32 %v711_v23, %v710_v1  ;;  %v604_v1 = vsel %vm163_vm5, %v596_v0, 0.0  ;;  %v559_v24 = vld [vmem:[#allocation2] sm:$0xff] }
 0x11b   :  { %v365_v25 = vpop.permute.xlu1 %364  ;;  %v573_v27 = vpop.permute.xlu0 %572  ;;  %vm1595_vm4 = vmand %vm429_vm10, %vm389_vm1  ;;  %vm430_vm11 = vcmp.eq.s32.totalorder %v422_v57, 1  ;;  %v754_v56 = vmul.f32 %v557_v21, %v557_v21  ;;  %v761_v60 = vsel %vm1574_vm8, %v1447_v63, 0.0  ;;  %v614_v36 = vsel %vm115_vm0, %v1445_v52, 0.0 }
 0x11c   :  { %v931_v17 = vsel %vm1595_vm4, 1.0, %v1002_v5  ;;  %vm374_vm13 = vcmp.gt.f32.partialorder %v1390_v39, %v365_v25  ;;  %v685_v29 = vadd.f32 %v684_v55, %v652_v3  ;;  %v744_v30 = vadd.f32 %v743_v46, %v742_v32 }
 0x11d   :  { %v715_v4 = vsel %vm118_vm9, %v931_v17, 0.0  ;;  %vm382_vm3 = vmor %vm326_vm12, %vm374_vm13  ;;  %v590_v34 = vsub.f32 %v1103_v14, %v573_v27  ;;  %v714_v2 = vadd.f32 %v713_v11, %v712_v47  ;;  %v518_v9 = vadd.f32 %v1416_v41, %v1359_v20 }
 0x11e   :  { %vm390_vm2 = vmxor %vm382_vm3, %vm1005_vm14  ;;  %686 = vst.msk [vmem:[#allocation4] sm:$0xff] %vm118_vm9, %v685_v29  ;;  %v745_v50 = vadd.f32 %v744_v30, %v721_v28  ;;  %v762_v63 = vsel %vm1595_vm4, %v754_v56, 0.0  ;;  %v616_v52 = vsel %vm115_vm0, %v604_v1, 0.0  ;;  %v773_v58 = vsel %vm118_vm9, %v761_v60, 0.0 }
 0x11f   :  { %v571_v40 = vpop.permute.xlu1 %570  ;;  %vm1616_vm15 = vmand %vm430_vm11, %vm390_vm2  ;;  %v716_v59 = vadd.f32 %v715_v4, %v714_v2  ;;  %v598_v38 = vand.u32 2147483647, %v590_v34  ;;  %v775_v49 = vsel %vm118_vm9, %v762_v63, 0.0  ;;  %v774_v15 = vadd.f32 %v773_v58, %v1570_v45 }
 0x120   :  { %v589_v8 = vsub.f32 %v1070_v7, %v571_v40  ;;  %v932_v61 = vsel %vm1616_vm15, 1.0, %v1002_v5  ;;  %746 = vst.msk [vmem:[#allocation6] sm:$0xff] %vm118_vm9, %v745_v50  ;;  %v615_v5 = vadd.f32 %v614_v36, %v1292_v33  ;;  %vm1687_vm5 = vcmp.gt.f32.partialorder %v1098_v13, 0.0 }
 0x121   :  { %v717_v10 = vsel %vm118_vm9, %v932_v61, 0.0  ;;  %v606_v35 = vsel %vm165_vm7, %v598_v38, 0.0  ;;  %v776_v33 = vadd.f32 %v775_v49, %v774_v15 }
 0x122   :  { %v597_v48 = vand.u32 2147483647, %v589_v8  ;;  %v718_v12 = vadd.f32 %v717_v10, %v716_v59  ;;  %v617_v57 = vadd.f32 %v616_v52, %v615_v5  ;;  %v620_v16 = vsel %vm115_vm0, %v606_v35, 0.0 }
 0x123   :  { %v549_v31 = vpop.permute.xlu1 %548 }
 0x124   :  { %v605_v20 = vsel %vm164_vm6, %v597_v48, 0.0  ;;  %v558_v41 = vsub.f32 %v518_v9, %v549_v31  ;;  %v719_v37 = vadd.f32 %v718_v12, %v687_v54 }
 0x125   :  { %v618_v42 = vsel %vm115_vm0, %v605_v20, 0.0  ;;  %v806_v21 = vld [vmem:[#allocation4] sm:$0xff] }
 0x126   :  { %v755_v43 = vmul.f32 %v558_v41, %v558_v41  ;;  %720 = vst.msk [vmem:[#allocation5] sm:$0xff] %vm118_vm9, %v719_v37  ;;  %v619_v19 = vadd.f32 %v618_v42, %v617_v57  ;;  %v807_v11 = vsel %vm118_vm9, %v806_v21, 0.0 }
 0x127   :  { %v575_v62 = vpop.permute.xlu1 %574  ;;  %v828_v45 = vld [vmem:[#allocation6] sm:$0xff] }
 0x128   :  { %v763_v7 = vsel %vm1616_vm15, %v755_v43, 0.0  ;;  %v591_v22 = vsub.f32 %v1098_v13, %v575_v62  ;;  %v829_v53 = vsel %vm118_vm9, %v828_v45, 0.0  ;;  %v621_v18 = vadd.f32 %v620_v16, %v619_v19 }
 0x129   :  { %v777_v26 = vsel %vm118_vm9, %v763_v7, 0.0  ;;  %830 = vadd.xlane.f32.xlu1 %v829_v53  ;;  %v125_v16 = vlaneseq }
 0x12a   :  { %v778_v23 = vadd.f32 %v777_v26, %v776_v33  ;;  %v599_v14 = vand.u32 2147483647, %v591_v22 }
 0x12c   :  { %v779_v0 = vadd.f32 %v778_v23, %v747_v51  ;;  %v607_v6 = vsel %vm1687_vm5, %v599_v14, 0.0  ;;  %v126_v51 = vshrl.u32 %v125_v16, 7 }
 0x12d   :  { %v622_v3 = vsel %vm115_vm0, %v607_v6, 0.0  ;;  %v817_v44 = vld [vmem:[#allocation5] sm:$0xff] }
 0x12e   :  { %780 = vst.msk [vmem:[#allocation7] sm:$0xff] %vm118_vm9, %v779_v0  ;;  %v623_v25 = vadd.f32 %v622_v3, %v621_v18  ;;  %v818_v13 = vsel %vm118_vm9, %v817_v44, 0.0  ;;  %vm853_vm6 = vcmp.eq.s32.totalorder %v126_v51, 1  ;;  %vm856_vm7 = vcmp.eq.s32.totalorder %v126_v51, 2 }
 0x12f   :  { %vm862_vm14 = vcmp.eq.s32.totalorder %v126_v51, 4  ;;  %vm865_vm12 = vcmp.eq.s32.totalorder %v126_v51, 5 }
 0x130   :  { %v624_v27 = vadd.f32 %v623_v25, %v559_v24 }
 0x132   :  { %625 = vst.msk [vmem:[#allocation2] sm:$0xff] %vm115_vm0, %v624_v27 }
 0x135   :  { %v839_v46 = vld [vmem:[#allocation7] sm:$0xff] }
 0x136   :  { %v840_v47 = vsel %vm118_vm9, %v839_v46, 0.0  ;;  %vm859_vm9 = vcmp.eq.s32.totalorder %v126_v51, 3 }
 0x139   :  { %v784_v55 = vld [vmem:[#allocation2] sm:$0xff] }
 0x13a   :  { %v785_v32 = vsel %vm115_vm0, %v784_v55, 0.0  ;;  %vm850_vm0 = vcmp.eq.s32.totalorder %v126_v51, 0 }
 0x13b   :  { %786 = vadd.xlane.f32.xlu0 %v785_v32 }
 0x13f   :  { %808 = vadd.xlane.f32.xlu0 %v807_v11 }
 0x143   :  { %819 = vadd.xlane.f32.xlu0 %v818_v13 }
 0x147   :  { %841 = vadd.xlane.f32.xlu0 %v840_v47 }
 0x159   :  { %v798_v28 = vpop.xlane.xlu1 %797 }
 0x15a   :  { %v799_v17 = vrot.slane %v798_v28, 4 }
 0x15c   :  { %v800_v29 = vadd.f32 %v799_v17, %v798_v28 }
 0x15e   :  { %v801_v4 = vrot.slane %v800_v29, 2 }
 0x160   :  { %v802_v40 = vadd.f32 %v801_v4, %v800_v29 }
 0x162   :  { %v803_v36 = vrot.slane %v802_v40, 1 }
 0x164   :  { %v804_v38 = vadd.f32 %v803_v36, %v802_v40 }
 0x1b6   :  { %v831_v30 = vpop.xlane.xlu1 %830 }
 0x1b7   :  { %v832_v34 = vrot.slane %v831_v30, 4 }
 0x1b9   :  { %v833_v56 = vadd.f32 %v832_v34, %v831_v30 }
 0x1bb   :  { %v834_v61 = vrot.slane %v833_v56, 2 }
 0x1bd   :  { %v835_v31 = vadd.f32 %v834_v61, %v833_v56 }
 0x1bf   :  { %v836_v15 = vrot.slane %v835_v31, 1 }
 0x1c1   :  { %v837_v19 = vadd.f32 %v836_v15, %v835_v31 }
 0x1c8   :  { %v787_v1 = vpop.xlane.xlu0 %786 }
 0x1c9   :  { %v788_v2 = vrot.slane %v787_v1, 4 }
 0x1cb   :  { %v789_v50 = vadd.f32 %v788_v2, %v787_v1 }
 0x1cc   :  { %v809_v60 = vpop.xlane.xlu0 %808 }
 0x1cd   :  { %v790_v39 = vrot.slane %v789_v50, 2  ;;  %v810_v8 = vrot.slane %v809_v60, 4 }
 0x1cf   :  { %v811_v59 = vadd.f32 %v810_v8, %v809_v60  ;;  %v791_v54 = vadd.f32 %v790_v39, %v789_v50 }
 0x1d0   :  { %v820_v9 = vpop.xlane.xlu0 %819 }
 0x1d1   :  { %v812_v63 = vrot.slane %v811_v59, 2  ;;  %v821_v10 = vrot.slane %v820_v9, 4  ;;  %v792_v48 = vrot.slane %v791_v54, 1 }
 0x1d3   :  { %v822_v52 = vadd.f32 %v821_v10, %v820_v9  ;;  %v793_v58 = vadd.f32 %v792_v48, %v791_v54  ;;  %v813_v12 = vadd.f32 %v812_v63, %v811_v59 }
 0x1d4   :  { %v842_v5 = vpop.xlane.xlu0 %841 }
 0x1d5   :  { %v823_v20 = vrot.slane %v822_v52, 2  ;;  %v843_v41 = vrot.slane %v842_v5, 4  ;;  %933 = vpush %v793_v58  ;;  %v814_v49 = vrot.slane %v813_v12, 1 }
 0x1d6   :  { %935 = vpush %v804_v38 }
 0x1d7   :  { %v844_v37 = vadd.f32 %v843_v41, %v842_v5  ;;  %v815_v42 = vadd.f32 %v814_v49, %v813_v12  ;;  %v824_v57 = vadd.f32 %v823_v20, %v822_v52 }
 0x1d9   :  { %v845_v35 = vrot.slane %v844_v37, 2  ;;  %937 = vpush %v815_v42  ;;  %v825_v43 = vrot.slane %v824_v57, 1 }
 0x1db   :  { %v846_v62 = vadd.f32 %v845_v35, %v844_v37  ;;  %v826_v33 = vadd.f32 %v825_v43, %v824_v57 }
 0x1dd   :  { %939 = vpush %v826_v33  ;;  %v847_v7 = vrot.slane %v846_v62, 1 }
 0x1de   :  { %941 = vpush %v837_v19 }
 0x1df   :  { %v848_v22 = vadd.f32 %v847_v7, %v846_v62 }
 0x1e1   :  { %943 = vpush %v848_v22 }
 0x206   :  { %s934_s1 = spop %933 }
 0x207   :  { %v851_v26 = vstv %s934_s1  ;;  %s936_s5 = spop %935 }
 0x208   :  { %v852_v45 = vsel %vm850_vm0, %v851_v26, 0.0  ;;  %v854_v23 = vstv %s936_s5 }
 0x209   :  { %v855_v53 = vsel %vm853_vm6, %v854_v23, %v852_v45 }
 0x20a   :  { %s938_s6 = spop %937 }
 0x20b   :  { %v857_v14 = vstv %s938_s6 }
 0x20c   :  { %v858_v18 = vsel %vm856_vm7, %v857_v14, %v855_v53 }
 0x20e   :  { %s940_s7 = spop %939 }
 0x20f   :  { %v860_v0 = vstv %s940_s7  ;;  %s942_s8 = spop %941 }
 0x210   :  { %v861_v6 = vsel %vm859_vm9, %v860_v0, %v858_v18  ;;  %v863_v24 = vstv %s942_s8 }
 0x211   :  { %v864_v3 = vsel %vm862_vm14, %v863_v24, %v861_v6 }
 0x212   :  { %s944_s11 = spop %943 }
 0x213   :  { %v866_v25 = vstv %s944_s11 }
 0x214   :  { %v867_v27 = vsel %vm865_vm12, %v866_v25, %v864_v3 }
 0x215   :  { %868 = vst [vmem:[#allocation8] sm:$0xff] %v867_v27 }
 0x216   :  { %987 = shalt.err (!%p984_p4)
}
 0x217   :  { %s988_s15 = scalar_lea.hbm %s1673_s3, 128 }
 0x218   :  { %p989_p5 = scmp.ne.s32.totalorder %s1673_s3, %s988_s15  ;;  %p992_p6 = scmp.lt.u32.totalorder %s988_s15, %s1673_s3 }
 0x21a   :  { %p994_p7 = pnand %p992_p6, %p989_p5 }
 0x21c   :  { %997 = shalt.err (!%p994_p7)
}
 0x21d   :  { %878 = dma.vmem_to_hbm [thread:$0]  %s876_s10, 128, %s1673_s3, [#allocation9]  }
 0x21e   :  { %998 = dma.done.wait [#allocation9], 128  }
 0x21f   :  { %999 = vsyncadd [#allocation9], 4294967168 }
 0x220   :  { %882 = vsyncpa [#allocation9], 1 }

</bundles_post_ra>
